<compile_context>
chip_gen: v5e
topology: v5e:2x2
jax: 0.10.0
libtpu: 0.0.40
codegen_flags: <defaults>
</compile_context>

<pallas_src>
import jax
import jax.numpy as jnp
from jax.experimental import pallas as pl
from jax.experimental.pallas import tpu as pltpu


def _round_up(v, m):
    return ((v + m - 1) // m) * m


def basic_lstm_forward(x, Wx, Wh, b, Wo, bo):
    """x: (T, 1, I); Wx: (I, 4H); Wh: (H, 4H); b: (1, 4H); Wo: (H, O); bo: (1, O)."""
    T, B, I = x.shape
    H = Wh.shape[0]
    O = Wo.shape[1]
    assert B == 1, "module semantics: batch dim of 1"
    G = 4 * H

    # Padded sizes: pad the gate axis as a whole (gates stay packed), pad the
    # output lanes to 128 for a dense store, pad time to a sublane multiple.
    Gp = _round_up(G, 128)
    Op = _round_up(O, 128)
    Tp = _round_up(T, 8)

    Wx_p = jnp.pad(Wx, ((0, 0), (0, Gp - G)))            # (I, Gp)
    Wh_p = jnp.pad(Wh, ((0, 0), (0, Gp - G)))            # (H, Gp)  -- 16 KiB at H=32
    b_p = jnp.pad(b, ((0, 0), (0, Gp - G)))              # (1, Gp)
    Wo_p = jnp.pad(Wo, ((0, 0), (0, Op - O)))            # (H, Op)
    bo_p = jnp.pad(bo, ((0, 0), (0, Op - O)))            # (1, Op)
    x2d = jnp.pad(x.reshape(T, I), ((0, Tp - T), (0, 0)))  # (Tp, I)

    def kernel(x_ref, wx_ref, wh_ref, b_ref, wo_ref, bo_ref, y_ref, pre_ref):
        # (1) Hoisted input projection: one (Tp, I) @ (I, Gp) matmul + bias.
        #     Off the critical path; lives in a tiny VMEM scratch.
        pre_ref[...] = (
            jnp.dot(x_ref[...], wx_ref[...], preferred_element_type=jnp.float32)
            + b_ref[...])

        # (2) Sequential recurrence, statically unrolled (T small & static).
        #     Only h @ Wh is on the serial chain; Wh is read from its ref each
        #     step (no long-lived hoisted value -> no spills).
        h = jnp.zeros((1, H), jnp.float32)
        c = jnp.zeros((1, H), jnp.float32)
        hs = []
        for t in range(T):
            gates = pre_ref[pl.ds(t, 1), :] + jnp.dot(
                h, wh_ref[...], preferred_element_type=jnp.float32)   # (1, Gp)
            i_t = jax.nn.sigmoid(gates[:, 0 * H:1 * H])
            f_t = jax.nn.sigmoid(gates[:, 1 * H:2 * H])
            g_t = jnp.tanh(gates[:, 2 * H:3 * H])
            o_t = jax.nn.sigmoid(gates[:, 3 * H:4 * H])
            c = f_t * c + i_t * g_t
            h = o_t * jnp.tanh(c)
            hs.append(h)
        if Tp > T:
            hs.append(jnp.zeros((Tp - T, H), jnp.float32))
        hs_all = jnp.concatenate(hs, axis=0)              # (Tp, H), register-resident

        # (3) Batched output projection + single lane-dense (unmasked) store.
        y_ref[...] = (
            jnp.dot(hs_all, wo_ref[...], preferred_element_type=jnp.float32)
            + bo_ref[...])

    out = pl.pallas_call(
        kernel,
        out_shape=jax.ShapeDtypeStruct((Tp, Op), jnp.float32),
        grid=(1,),
        in_specs=[
            pl.BlockSpec((Tp, I), lambda i: (0, 0)),    # x (flattened, row-padded)
            pl.BlockSpec((I, Gp), lambda i: (0, 0)),    # Wx
            pl.BlockSpec((H, Gp), lambda i: (0, 0)),    # Wh (packed gates)
            pl.BlockSpec((1, Gp), lambda i: (0, 0)),    # b
            pl.BlockSpec((H, Op), lambda i: (0, 0)),    # Wo
            pl.BlockSpec((1, Op), lambda i: (0, 0)),    # bo
        ],
        out_specs=pl.BlockSpec((Tp, Op), lambda i: (0, 0)),
        scratch_shapes=[
            pltpu.VMEM((Tp, Gp), jnp.float32),          # hoisted input gates
        ],
        compiler_params=pltpu.CompilerParams(
            dimension_semantics=("arbitrary",),         # single sequential invocation
        ),
    )(x2d, Wx_p, Wh_p, b_p, Wo_p, bo_p)

    return out[:T, :O].reshape(T, 1, O)


def reference_forward(x, Wx, Wh, b, Wo, bo):
    """Pure-JAX reference mirroring the PyTorch loop."""
    T = x.shape[0]
    H = Wh.shape[0]
    h = jnp.zeros((1, H), jnp.float32)
    c = jnp.zeros((1, H), jnp.float32)
    ys = []
    for t in range(T):
        gates = x[t] @ Wx + h @ Wh + b
        i_t, f_t, g_t, o_t = jnp.split(gates, 4, axis=1)
        i_t = jax.nn.sigmoid(i_t)
        f_t = jax.nn.sigmoid(f_t)
        g_t = jnp.tanh(g_t)
        o_t = jax.nn.sigmoid(o_t)
        c = f_t * c + i_t * g_t
        h = o_t * jnp.tanh(c)
        ys.append(h @ Wo + bo)
    return jnp.stack(ys)


if __name__ == "__main__":
    T = 8            # sequence length
    I = 16           # input_size
    H = 32           # hidden_size
    O = 8            # output_size

    key = jax.random.PRNGKey(0)
    kx, k1, k2, k3, k4, k5 = jax.random.split(key, 6)

    # Deterministic parameter init (uniform, PyTorch-Linear-style scale).
    lim_w = 1.0 / jnp.sqrt(jnp.float32(I + H))
    lim_o = 1.0 / jnp.sqrt(jnp.float32(H))
    Wx = jax.random.uniform(k1, (I, 4 * H), jnp.float32, -lim_w, lim_w)
    Wh = jax.random.uniform(k2, (H, 4 * H), jnp.float32, -lim_w, lim_w)
    b = jax.random.uniform(k3, (1, 4 * H), jnp.float32, -lim_w, lim_w)
    Wo = jax.random.uniform(k4, (H, O), jnp.float32, -lim_o, lim_o)
    bo = jax.random.uniform(k5, (1, O), jnp.float32, -lim_o, lim_o)

    x = jax.random.normal(kx, (T, 1, I), jnp.float32)

    y = basic_lstm_forward(x, Wx, Wh, b, Wo, bo)
    y = jax.block_until_ready(y)

    y_ref = reference_forward(x, Wx, Wh, b, Wo, bo)
    assert y.shape == (T, 1, O)
    assert jnp.allclose(y, y_ref, atol=1e-4, rtol=1e-4), "mismatch vs reference"

    print("KERNEL_OK")
</pallas_src>

<mosaic_0001>
module attributes {stable_mosaic.version = 11 : i64} {
  func.func @kernel(%arg0: i32, %arg1: memref<8x16xf32, #tpu.memory_space<vmem>>, %arg2: memref<16x128xf32, #tpu.memory_space<vmem>>, %arg3: memref<32x128xf32, #tpu.memory_space<vmem>>, %arg4: memref<1x128xf32, #tpu.memory_space<vmem>>, %arg5: memref<32x128xf32, #tpu.memory_space<vmem>>, %arg6: memref<1x128xf32, #tpu.memory_space<vmem>>, %arg7: memref<8x128xf32, #tpu.memory_space<vmem>>, %arg8: memref<8x128xf32, #tpu.memory_space<vmem>>) attributes {dimension_semantics = [#tpu.dimension_semantics<arbitrary>], iteration_bounds = array<i64: 1>, scalar_prefetch = 0 : i64, scratch_operands = 1 : i64, tpu.core_type = #tpu.core_type<tc>, window_params = [{pipeline_mode = #tpu.pipeline_mode<synchronous>, transform_indices = @transform_0, window_bounds = array<i64: 8, 16>}, {pipeline_mode = #tpu.pipeline_mode<synchronous>, transform_indices = @transform_1, window_bounds = array<i64: 16, 128>}, {pipeline_mode = #tpu.pipeline_mode<synchronous>, transform_indices = @transform_2, window_bounds = array<i64: 32, 128>}, {pipeline_mode = #tpu.pipeline_mode<synchronous>, transform_indices = @transform_3, window_bounds = array<i64: 1, 128>}, {pipeline_mode = #tpu.pipeline_mode<synchronous>, transform_indices = @transform_4, window_bounds = array<i64: 32, 128>}, {pipeline_mode = #tpu.pipeline_mode<synchronous>, transform_indices = @transform_5, window_bounds = array<i64: 1, 128>}, {pipeline_mode = #tpu.pipeline_mode<synchronous>, transform_indices = @transform_6, window_bounds = array<i64: 8, 128>}]} {
    %c0 = arith.constant 0 : index
    %c0_0 = arith.constant 0 : index
    %0 = vector.load %arg1[%c0, %c0_0] : memref<8x16xf32, #tpu.memory_space<vmem>>, vector<8x16xf32>
    %c0_1 = arith.constant 0 : index
    %c0_2 = arith.constant 0 : index
    %1 = vector.load %arg2[%c0_1, %c0_2] : memref<16x128xf32, #tpu.memory_space<vmem>>, vector<16x128xf32>
    %cst = arith.constant dense<0.000000e+00> : vector<8x128xf32>
    %2 = tpu.matmul %0, %1, %cst {dimension_numbers = #tpu.dot_dimension_numbers<[1], [0], [0], [1], [0, 0, 1, 1], [], []>} : vector<8x16xf32>, vector<16x128xf32>, vector<8x128xf32> -> vector<8x128xf32>
    %c0_3 = arith.constant 0 : index
    %c0_4 = arith.constant 0 : index
    %3 = vector.load %arg4[%c0_3, %c0_4] : memref<1x128xf32, #tpu.memory_space<vmem>>, vector<1x128xf32>
    %4 = vector.broadcast %3 : vector<1x128xf32> to vector<8x128xf32>
    %5 = arith.addf %2, %4 : vector<8x128xf32>
    %c0_5 = arith.constant 0 : index
    %c0_6 = arith.constant 0 : index
    %6 = vector.load %arg8[%c0_5, %c0_6] : memref<8x128xf32, #tpu.memory_space<vmem>>, vector<8x128xf32>
    tpu.vector_store %arg8[%c0_5, %c0_6], %5 {strides = array<i32>} : memref<8x128xf32, #tpu.memory_space<vmem>>, vector<8x128xf32>,
    %cst_7 = arith.constant 0.000000e+00 : f32
    %7 = vector.broadcast %cst_7 : f32 to vector<1x32xf32>
    %cst_8 = arith.constant 0.000000e+00 : f32
    %8 = vector.broadcast %cst_8 : f32 to vector<1x32xf32>
    %c0_9 = arith.constant 0 : index
    %c0_10 = arith.constant 0 : index
    %9 = vector.load %arg8[%c0_9, %c0_10] : memref<8x128xf32, #tpu.memory_space<vmem>>, vector<1x128xf32>
    %c0_11 = arith.constant 0 : index
    %c0_12 = arith.constant 0 : index
    %10 = vector.load %arg3[%c0_11, %c0_12] : memref<32x128xf32, #tpu.memory_space<vmem>>, vector<32x128xf32>
    %cst_13 = arith.constant dense<0.000000e+00> : vector<1x128xf32>
    %11 = tpu.matmul %7, %10, %cst_13 {dimension_numbers = #tpu.dot_dimension_numbers<[1], [0], [0], [1], [0, 0, 1, 1], [], []>} : vector<1x32xf32>, vector<32x128xf32>, vector<1x128xf32> -> vector<1x128xf32>
    %12 = arith.addf %9, %11 : vector<1x128xf32>
    %13 = vector.extract_strided_slice %12 {offsets = [0, 0], sizes = [1, 32], strides = [1, 1]} : vector<1x128xf32> to vector<1x32xf32>
    %14 = arith.negf %13 : vector<1x32xf32>
    %15 = math.exp %14 : vector<1x32xf32>
    %cst_14 = arith.constant 1.000000e+00 : f32
    %16 = vector.broadcast %cst_14 : f32 to vector<1x32xf32>
    %17 = arith.addf %16, %15 : vector<1x32xf32>
    %18 = arith.divf %16, %17 : vector<1x32xf32>
    %19 = vector.extract_strided_slice %12 {offsets = [0, 32], sizes = [1, 32], strides = [1, 1]} : vector<1x128xf32> to vector<1x32xf32>
    %20 = arith.negf %19 : vector<1x32xf32>
    %21 = math.exp %20 : vector<1x32xf32>
    %cst_15 = arith.constant 1.000000e+00 : f32
    %22 = vector.broadcast %cst_15 : f32 to vector<1x32xf32>
    %23 = arith.addf %22, %21 : vector<1x32xf32>
    %24 = arith.divf %22, %23 : vector<1x32xf32>
    %25 = vector.extract_strided_slice %12 {offsets = [0, 64], sizes = [1, 32], strides = [1, 1]} : vector<1x128xf32> to vector<1x32xf32>
    %26 = math.tanh %25 : vector<1x32xf32>
    %27 = vector.extract_strided_slice %12 {offsets = [0, 96], sizes = [1, 32], strides = [1, 1]} : vector<1x128xf32> to vector<1x32xf32>
    %28 = arith.negf %27 : vector<1x32xf32>
    %29 = math.exp %28 : vector<1x32xf32>
    %cst_16 = arith.constant 1.000000e+00 : f32
    %30 = vector.broadcast %cst_16 : f32 to vector<1x32xf32>
    %31 = arith.addf %30, %29 : vector<1x32xf32>
    %32 = arith.divf %30, %31 : vector<1x32xf32>
    %33 = arith.mulf %24, %8 : vector<1x32xf32>
    %34 = arith.mulf %18, %26 : vector<1x32xf32>
    %35 = arith.addf %33, %34 : vector<1x32xf32>
    %36 = math.tanh %35 : vector<1x32xf32>
    %37 = arith.mulf %32, %36 : vector<1x32xf32>
    %c1 = arith.constant 1 : index
    %c0_17 = arith.constant 0 : index
    %38 = vector.load %arg8[%c1, %c0_17] : memref<8x128xf32, #tpu.memory_space<vmem>>, vector<1x128xf32>
    %c0_18 = arith.constant 0 : index
    %c0_19 = arith.constant 0 : index
    %39 = vector.load %arg3[%c0_18, %c0_19] : memref<32x128xf32, #tpu.memory_space<vmem>>, vector<32x128xf32>
    %cst_20 = arith.constant dense<0.000000e+00> : vector<1x128xf32>
    %40 = tpu.matmul %37, %39, %cst_20 {dimension_numbers = #tpu.dot_dimension_numbers<[1], [0], [0], [1], [0, 0, 1, 1], [], []>} : vector<1x32xf32>, vector<32x128xf32>, vector<1x128xf32> -> vector<1x128xf32>
    %41 = arith.addf %38, %40 : vector<1x128xf32>
    %42 = vector.extract_strided_slice %41 {offsets = [0, 0], sizes = [1, 32], strides = [1, 1]} : vector<1x128xf32> to vector<1x32xf32>
    %43 = arith.negf %42 : vector<1x32xf32>
    %44 = math.exp %43 : vector<1x32xf32>
    %cst_21 = arith.constant 1.000000e+00 : f32
    %45 = vector.broadcast %cst_21 : f32 to vector<1x32xf32>
    %46 = arith.addf %45, %44 : vector<1x32xf32>
    %47 = arith.divf %45, %46 : vector<1x32xf32>
    %48 = vector.extract_strided_slice %41 {offsets = [0, 32], sizes = [1, 32], strides = [1, 1]} : vector<1x128xf32> to vector<1x32xf32>
    %49 = arith.negf %48 : vector<1x32xf32>
    %50 = math.exp %49 : vector<1x32xf32>
    %cst_22 = arith.constant 1.000000e+00 : f32
    %51 = vector.broadcast %cst_22 : f32 to vector<1x32xf32>
    %52 = arith.addf %51, %50 : vector<1x32xf32>
    %53 = arith.divf %51, %52 : vector<1x32xf32>
    %54 = vector.extract_strided_slice %41 {offsets = [0, 64], sizes = [1, 32], strides = [1, 1]} : vector<1x128xf32> to vector<1x32xf32>
    %55 = math.tanh %54 : vector<1x32xf32>
    %56 = vector.extract_strided_slice %41 {offsets = [0, 96], sizes = [1, 32], strides = [1, 1]} : vector<1x128xf32> to vector<1x32xf32>
    %57 = arith.negf %56 : vector<1x32xf32>
    %58 = math.exp %57 : vector<1x32xf32>
    %cst_23 = arith.constant 1.000000e+00 : f32
    %59 = vector.broadcast %cst_23 : f32 to vector<1x32xf32>
    %60 = arith.addf %59, %58 : vector<1x32xf32>
    %61 = arith.divf %59, %60 : vector<1x32xf32>
    %62 = arith.mulf %53, %35 : vector<1x32xf32>
    %63 = arith.mulf %47, %55 : vector<1x32xf32>
    %64 = arith.addf %62, %63 : vector<1x32xf32>
    %65 = math.tanh %64 : vector<1x32xf32>
    %66 = arith.mulf %61, %65 : vector<1x32xf32>
    %c2 = arith.constant 2 : index
    %c0_24 = arith.constant 0 : index
    %67 = vector.load %arg8[%c2, %c0_24] : memref<8x128xf32, #tpu.memory_space<vmem>>, vector<1x128xf32>
    %c0_25 = arith.constant 0 : index
    %c0_26 = arith.constant 0 : index
    %68 = vector.load %arg3[%c0_25, %c0_26] : memref<32x128xf32, #tpu.memory_space<vmem>>, vector<32x128xf32>
    %cst_27 = arith.constant dense<0.000000e+00> : vector<1x128xf32>
    %69 = tpu.matmul %66, %68, %cst_27 {dimension_numbers = #tpu.dot_dimension_numbers<[1], [0], [0], [1], [0, 0, 1, 1], [], []>} : vector<1x32xf32>, vector<32x128xf32>, vector<1x128xf32> -> vector<1x128xf32>
    %70 = arith.addf %67, %69 : vector<1x128xf32>
    %71 = vector.extract_strided_slice %70 {offsets = [0, 0], sizes = [1, 32], strides = [1, 1]} : vector<1x128xf32> to vector<1x32xf32>
    %72 = arith.negf %71 : vector<1x32xf32>
    %73 = math.exp %72 : vector<1x32xf32>
    %cst_28 = arith.constant 1.000000e+00 : f32
    %74 = vector.broadcast %cst_28 : f32 to vector<1x32xf32>
    %75 = arith.addf %74, %73 : vector<1x32xf32>
    %76 = arith.divf %74, %75 : vector<1x32xf32>
    %77 = vector.extract_strided_slice %70 {offsets = [0, 32], sizes = [1, 32], strides = [1, 1]} : vector<1x128xf32> to vector<1x32xf32>
    %78 = arith.negf %77 : vector<1x32xf32>
    %79 = math.exp %78 : vector<1x32xf32>
    %cst_29 = arith.constant 1.000000e+00 : f32
    %80 = vector.broadcast %cst_29 : f32 to vector<1x32xf32>
    %81 = arith.addf %80, %79 : vector<1x32xf32>
    %82 = arith.divf %80, %81 : vector<1x32xf32>
    %83 = vector.extract_strided_slice %70 {offsets = [0, 64], sizes = [1, 32], strides = [1, 1]} : vector<1x128xf32> to vector<1x32xf32>
    %84 = math.tanh %83 : vector<1x32xf32>
    %85 = vector.extract_strided_slice %70 {offsets = [0, 96], sizes = [1, 32], strides = [1, 1]} : vector<1x128xf32> to vector<1x32xf32>
    %86 = arith.negf %85 : vector<1x32xf32>
    %87 = math.exp %86 : vector<1x32xf32>
    %cst_30 = arith.constant 1.000000e+00 : f32
    %88 = vector.broadcast %cst_30 : f32 to vector<1x32xf32>
    %89 = arith.addf %88, %87 : vector<1x32xf32>
    %90 = arith.divf %88, %89 : vector<1x32xf32>
    %91 = arith.mulf %82, %64 : vector<1x32xf32>
    %92 = arith.mulf %76, %84 : vector<1x32xf32>
    %93 = arith.addf %91, %92 : vector<1x32xf32>
    %94 = math.tanh %93 : vector<1x32xf32>
    %95 = arith.mulf %90, %94 : vector<1x32xf32>
    %c3 = arith.constant 3 : index
    %c0_31 = arith.constant 0 : index
    %96 = vector.load %arg8[%c3, %c0_31] : memref<8x128xf32, #tpu.memory_space<vmem>>, vector<1x128xf32>
    %c0_32 = arith.constant 0 : index
    %c0_33 = arith.constant 0 : index
    %97 = vector.load %arg3[%c0_32, %c0_33] : memref<32x128xf32, #tpu.memory_space<vmem>>, vector<32x128xf32>
    %cst_34 = arith.constant dense<0.000000e+00> : vector<1x128xf32>
    %98 = tpu.matmul %95, %97, %cst_34 {dimension_numbers = #tpu.dot_dimension_numbers<[1], [0], [0], [1], [0, 0, 1, 1], [], []>} : vector<1x32xf32>, vector<32x128xf32>, vector<1x128xf32> -> vector<1x128xf32>
    %99 = arith.addf %96, %98 : vector<1x128xf32>
    %100 = vector.extract_strided_slice %99 {offsets = [0, 0], sizes = [1, 32], strides = [1, 1]} : vector<1x128xf32> to vector<1x32xf32>
    %101 = arith.negf %100 : vector<1x32xf32>
    %102 = math.exp %101 : vector<1x32xf32>
    %cst_35 = arith.constant 1.000000e+00 : f32
    %103 = vector.broadcast %cst_35 : f32 to vector<1x32xf32>
    %104 = arith.addf %103, %102 : vector<1x32xf32>
    %105 = arith.divf %103, %104 : vector<1x32xf32>
    %106 = vector.extract_strided_slice %99 {offsets = [0, 32], sizes = [1, 32], strides = [1, 1]} : vector<1x128xf32> to vector<1x32xf32>
    %107 = arith.negf %106 : vector<1x32xf32>
    %108 = math.exp %107 : vector<1x32xf32>
    %cst_36 = arith.constant 1.000000e+00 : f32
    %109 = vector.broadcast %cst_36 : f32 to vector<1x32xf32>
    %110 = arith.addf %109, %108 : vector<1x32xf32>
    %111 = arith.divf %109, %110 : vector<1x32xf32>
    %112 = vector.extract_strided_slice %99 {offsets = [0, 64], sizes = [1, 32], strides = [1, 1]} : vector<1x128xf32> to vector<1x32xf32>
    %113 = math.tanh %112 : vector<1x32xf32>
    %114 = vector.extract_strided_slice %99 {offsets = [0, 96], sizes = [1, 32], strides = [1, 1]} : vector<1x128xf32> to vector<1x32xf32>
    %115 = arith.negf %114 : vector<1x32xf32>
    %116 = math.exp %115 : vector<1x32xf32>
    %cst_37 = arith.constant 1.000000e+00 : f32
    %117 = vector.broadcast %cst_37 : f32 to vector<1x32xf32>
    %118 = arith.addf %117, %116 : vector<1x32xf32>
    %119 = arith.divf %117, %118 : vector<1x32xf32>
    %120 = arith.mulf %111, %93 : vector<1x32xf32>
    %121 = arith.mulf %105, %113 : vector<1x32xf32>
    %122 = arith.addf %120, %121 : vector<1x32xf32>
    %123 = math.tanh %122 : vector<1x32xf32>
    %124 = arith.mulf %119, %123 : vector<1x32xf32>
    %c4 = arith.constant 4 : index
    %c0_38 = arith.constant 0 : index
    %125 = vector.load %arg8[%c4, %c0_38] : memref<8x128xf32, #tpu.memory_space<vmem>>, vector<1x128xf32>
    %c0_39 = arith.constant 0 : index
    %c0_40 = arith.constant 0 : index
    %126 = vector.load %arg3[%c0_39, %c0_40] : memref<32x128xf32, #tpu.memory_space<vmem>>, vector<32x128xf32>
    %cst_41 = arith.constant dense<0.000000e+00> : vector<1x128xf32>
    %127 = tpu.matmul %124, %126, %cst_41 {dimension_numbers = #tpu.dot_dimension_numbers<[1], [0], [0], [1], [0, 0, 1, 1], [], []>} : vector<1x32xf32>, vector<32x128xf32>, vector<1x128xf32> -> vector<1x128xf32>
    %128 = arith.addf %125, %127 : vector<1x128xf32>
    %129 = vector.extract_strided_slice %128 {offsets = [0, 0], sizes = [1, 32], strides = [1, 1]} : vector<1x128xf32> to vector<1x32xf32>
    %130 = arith.negf %129 : vector<1x32xf32>
    %131 = math.exp %130 : vector<1x32xf32>
    %cst_42 = arith.constant 1.000000e+00 : f32
    %132 = vector.broadcast %cst_42 : f32 to vector<1x32xf32>
    %133 = arith.addf %132, %131 : vector<1x32xf32>
    %134 = arith.divf %132, %133 : vector<1x32xf32>
    %135 = vector.extract_strided_slice %128 {offsets = [0, 32], sizes = [1, 32], strides = [1, 1]} : vector<1x128xf32> to vector<1x32xf32>
    %136 = arith.negf %135 : vector<1x32xf32>
    %137 = math.exp %136 : vector<1x32xf32>
    %cst_43 = arith.constant 1.000000e+00 : f32
    %138 = vector.broadcast %cst_43 : f32 to vector<1x32xf32>
    %139 = arith.addf %138, %137 : vector<1x32xf32>
    %140 = arith.divf %138, %139 : vector<1x32xf32>
    %141 = vector.extract_strided_slice %128 {offsets = [0, 64], sizes = [1, 32], strides = [1, 1]} : vector<1x128xf32> to vector<1x32xf32>
    %142 = math.tanh %141 : vector<1x32xf32>
    %143 = vector.extract_strided_slice %128 {offsets = [0, 96], sizes = [1, 32], strides = [1, 1]} : vector<1x128xf32> to vector<1x32xf32>
    %144 = arith.negf %143 : vector<1x32xf32>
    %145 = math.exp %144 : vector<1x32xf32>
    %cst_44 = arith.constant 1.000000e+00 : f32
    %146 = vector.broadcast %cst_44 : f32 to vector<1x32xf32>
    %147 = arith.addf %146, %145 : vector<1x32xf32>
    %148 = arith.divf %146, %147 : vector<1x32xf32>
    %149 = arith.mulf %140, %122 : vector<1x32xf32>
    %150 = arith.mulf %134, %142 : vector<1x32xf32>
    %151 = arith.addf %149, %150 : vector<1x32xf32>
    %152 = math.tanh %151 : vector<1x32xf32>
    %153 = arith.mulf %148, %152 : vector<1x32xf32>
    %c5 = arith.constant 5 : index
    %c0_45 = arith.constant 0 : index
    %154 = vector.load %arg8[%c5, %c0_45] : memref<8x128xf32, #tpu.memory_space<vmem>>, vector<1x128xf32>
    %c0_46 = arith.constant 0 : index
    %c0_47 = arith.constant 0 : index
    %155 = vector.load %arg3[%c0_46, %c0_47] : memref<32x128xf32, #tpu.memory_space<vmem>>, vector<32x128xf32>
    %cst_48 = arith.constant dense<0.000000e+00> : vector<1x128xf32>
    %156 = tpu.matmul %153, %155, %cst_48 {dimension_numbers = #tpu.dot_dimension_numbers<[1], [0], [0], [1], [0, 0, 1, 1], [], []>} : vector<1x32xf32>, vector<32x128xf32>, vector<1x128xf32> -> vector<1x128xf32>
    %157 = arith.addf %154, %156 : vector<1x128xf32>
    %158 = vector.extract_strided_slice %157 {offsets = [0, 0], sizes = [1, 32], strides = [1, 1]} : vector<1x128xf32> to vector<1x32xf32>
    %159 = arith.negf %158 : vector<1x32xf32>
    %160 = math.exp %159 : vector<1x32xf32>
    %cst_49 = arith.constant 1.000000e+00 : f32
    %161 = vector.broadcast %cst_49 : f32 to vector<1x32xf32>
    %162 = arith.addf %161, %160 : vector<1x32xf32>
    %163 = arith.divf %161, %162 : vector<1x32xf32>
    %164 = vector.extract_strided_slice %157 {offsets = [0, 32], sizes = [1, 32], strides = [1, 1]} : vector<1x128xf32> to vector<1x32xf32>
    %165 = arith.negf %164 : vector<1x32xf32>
    %166 = math.exp %165 : vector<1x32xf32>
    %cst_50 = arith.constant 1.000000e+00 : f32
    %167 = vector.broadcast %cst_50 : f32 to vector<1x32xf32>
    %168 = arith.addf %167, %166 : vector<1x32xf32>
    %169 = arith.divf %167, %168 : vector<1x32xf32>
    %170 = vector.extract_strided_slice %157 {offsets = [0, 64], sizes = [1, 32], strides = [1, 1]} : vector<1x128xf32> to vector<1x32xf32>
    %171 = math.tanh %170 : vector<1x32xf32>
    %172 = vector.extract_strided_slice %157 {offsets = [0, 96], sizes = [1, 32], strides = [1, 1]} : vector<1x128xf32> to vector<1x32xf32>
    %173 = arith.negf %172 : vector<1x32xf32>
    %174 = math.exp %173 : vector<1x32xf32>
    %cst_51 = arith.constant 1.000000e+00 : f32
    %175 = vector.broadcast %cst_51 : f32 to vector<1x32xf32>
    %176 = arith.addf %175, %174 : vector<1x32xf32>
    %177 = arith.divf %175, %176 : vector<1x32xf32>
    %178 = arith.mulf %169, %151 : vector<1x32xf32>
    %179 = arith.mulf %163, %171 : vector<1x32xf32>
    %180 = arith.addf %178, %179 : vector<1x32xf32>
    %181 = math.tanh %180 : vector<1x32xf32>
    %182 = arith.mulf %177, %181 : vector<1x32xf32>
    %c6 = arith.constant 6 : index
    %c0_52 = arith.constant 0 : index
    %183 = vector.load %arg8[%c6, %c0_52] : memref<8x128xf32, #tpu.memory_space<vmem>>, vector<1x128xf32>
    %c0_53 = arith.constant 0 : index
    %c0_54 = arith.constant 0 : index
    %184 = vector.load %arg3[%c0_53, %c0_54] : memref<32x128xf32, #tpu.memory_space<vmem>>, vector<32x128xf32>
    %cst_55 = arith.constant dense<0.000000e+00> : vector<1x128xf32>
    %185 = tpu.matmul %182, %184, %cst_55 {dimension_numbers = #tpu.dot_dimension_numbers<[1], [0], [0], [1], [0, 0, 1, 1], [], []>} : vector<1x32xf32>, vector<32x128xf32>, vector<1x128xf32> -> vector<1x128xf32>
    %186 = arith.addf %183, %185 : vector<1x128xf32>
    %187 = vector.extract_strided_slice %186 {offsets = [0, 0], sizes = [1, 32], strides = [1, 1]} : vector<1x128xf32> to vector<1x32xf32>
    %188 = arith.negf %187 : vector<1x32xf32>
    %189 = math.exp %188 : vector<1x32xf32>
    %cst_56 = arith.constant 1.000000e+00 : f32
    %190 = vector.broadcast %cst_56 : f32 to vector<1x32xf32>
    %191 = arith.addf %190, %189 : vector<1x32xf32>
    %192 = arith.divf %190, %191 : vector<1x32xf32>
    %193 = vector.extract_strided_slice %186 {offsets = [0, 32], sizes = [1, 32], strides = [1, 1]} : vector<1x128xf32> to vector<1x32xf32>
    %194 = arith.negf %193 : vector<1x32xf32>
    %195 = math.exp %194 : vector<1x32xf32>
    %cst_57 = arith.constant 1.000000e+00 : f32
    %196 = vector.broadcast %cst_57 : f32 to vector<1x32xf32>
    %197 = arith.addf %196, %195 : vector<1x32xf32>
    %198 = arith.divf %196, %197 : vector<1x32xf32>
    %199 = vector.extract_strided_slice %186 {offsets = [0, 64], sizes = [1, 32], strides = [1, 1]} : vector<1x128xf32> to vector<1x32xf32>
    %200 = math.tanh %199 : vector<1x32xf32>
    %201 = vector.extract_strided_slice %186 {offsets = [0, 96], sizes = [1, 32], strides = [1, 1]} : vector<1x128xf32> to vector<1x32xf32>
    %202 = arith.negf %201 : vector<1x32xf32>
    %203 = math.exp %202 : vector<1x32xf32>
    %cst_58 = arith.constant 1.000000e+00 : f32
    %204 = vector.broadcast %cst_58 : f32 to vector<1x32xf32>
    %205 = arith.addf %204, %203 : vector<1x32xf32>
    %206 = arith.divf %204, %205 : vector<1x32xf32>
    %207 = arith.mulf %198, %180 : vector<1x32xf32>
    %208 = arith.mulf %192, %200 : vector<1x32xf32>
    %209 = arith.addf %207, %208 : vector<1x32xf32>
    %210 = math.tanh %209 : vector<1x32xf32>
    %211 = arith.mulf %206, %210 : vector<1x32xf32>
    %c7 = arith.constant 7 : index
    %c0_59 = arith.constant 0 : index
    %212 = vector.load %arg8[%c7, %c0_59] : memref<8x128xf32, #tpu.memory_space<vmem>>, vector<1x128xf32>
    %c0_60 = arith.constant 0 : index
    %c0_61 = arith.constant 0 : index
    %213 = vector.load %arg3[%c0_60, %c0_61] : memref<32x128xf32, #tpu.memory_space<vmem>>, vector<32x128xf32>
    %cst_62 = arith.constant dense<0.000000e+00> : vector<1x128xf32>
    %214 = tpu.matmul %211, %213, %cst_62 {dimension_numbers = #tpu.dot_dimension_numbers<[1], [0], [0], [1], [0, 0, 1, 1], [], []>} : vector<1x32xf32>, vector<32x128xf32>, vector<1x128xf32> -> vector<1x128xf32>
    %215 = arith.addf %212, %214 : vector<1x128xf32>
    %216 = vector.extract_strided_slice %215 {offsets = [0, 0], sizes = [1, 32], strides = [1, 1]} : vector<1x128xf32> to vector<1x32xf32>
    %217 = arith.negf %216 : vector<1x32xf32>
    %218 = math.exp %217 : vector<1x32xf32>
    %cst_63 = arith.constant 1.000000e+00 : f32
    %219 = vector.broadcast %cst_63 : f32 to vector<1x32xf32>
    %220 = arith.addf %219, %218 : vector<1x32xf32>
    %221 = arith.divf %219, %220 : vector<1x32xf32>
    %222 = vector.extract_strided_slice %215 {offsets = [0, 32], sizes = [1, 32], strides = [1, 1]} : vector<1x128xf32> to vector<1x32xf32>
    %223 = arith.negf %222 : vector<1x32xf32>
    %224 = math.exp %223 : vector<1x32xf32>
    %cst_64 = arith.constant 1.000000e+00 : f32
    %225 = vector.broadcast %cst_64 : f32 to vector<1x32xf32>
    %226 = arith.addf %225, %224 : vector<1x32xf32>
    %227 = arith.divf %225, %226 : vector<1x32xf32>
    %228 = vector.extract_strided_slice %215 {offsets = [0, 64], sizes = [1, 32], strides = [1, 1]} : vector<1x128xf32> to vector<1x32xf32>
    %229 = math.tanh %228 : vector<1x32xf32>
    %230 = vector.extract_strided_slice %215 {offsets = [0, 96], sizes = [1, 32], strides = [1, 1]} : vector<1x128xf32> to vector<1x32xf32>
    %231 = arith.negf %230 : vector<1x32xf32>
    %232 = math.exp %231 : vector<1x32xf32>
    %cst_65 = arith.constant 1.000000e+00 : f32
    %233 = vector.broadcast %cst_65 : f32 to vector<1x32xf32>
    %234 = arith.addf %233, %232 : vector<1x32xf32>
    %235 = arith.divf %233, %234 : vector<1x32xf32>
    %236 = arith.mulf %227, %209 : vector<1x32xf32>
    %237 = arith.mulf %221, %229 : vector<1x32xf32>
    %238 = arith.addf %236, %237 : vector<1x32xf32>
    %239 = math.tanh %238 : vector<1x32xf32>
    %240 = arith.mulf %235, %239 : vector<1x32xf32>
    %241 = tpu.concatenate %37, %66, %95, %124, %153, %182, %211, %240 in 0 : vector<1x32xf32>, vector<1x32xf32>, vector<1x32xf32>, vector<1x32xf32>, vector<1x32xf32>, vector<1x32xf32>, vector<1x32xf32>, vector<1x32xf32> -> vector<8x32xf32>
    %c0_66 = arith.constant 0 : index
    %c0_67 = arith.constant 0 : index
    %242 = vector.load %arg5[%c0_66, %c0_67] : memref<32x128xf32, #tpu.memory_space<vmem>>, vector<32x128xf32>
    %cst_68 = arith.constant dense<0.000000e+00> : vector<8x128xf32>
    %243 = tpu.matmul %241, %242, %cst_68 {dimension_numbers = #tpu.dot_dimension_numbers<[1], [0], [0], [1], [0, 0, 1, 1], [], []>} : vector<8x32xf32>, vector<32x128xf32>, vector<8x128xf32> -> vector<8x128xf32>
    %c0_69 = arith.constant 0 : index
    %c0_70 = arith.constant 0 : index
    %244 = vector.load %arg6[%c0_69, %c0_70] : memref<1x128xf32, #tpu.memory_space<vmem>>, vector<1x128xf32>
    %245 = vector.broadcast %244 : vector<1x128xf32> to vector<8x128xf32>
    %246 = arith.addf %243, %245 : vector<8x128xf32>
    %c0_71 = arith.constant 0 : index
    %c0_72 = arith.constant 0 : index
    %247 = vector.load %arg7[%c0_71, %c0_72] : memref<8x128xf32, #tpu.memory_space<vmem>>, vector<8x128xf32>
    tpu.vector_store %arg7[%c0_71, %c0_72], %246 {strides = array<i32>} : memref<8x128xf32, #tpu.memory_space<vmem>>, vector<8x128xf32>,
    return
  }
  func.func @transform_0(%arg0: i32) -> (i32, i32) {
    %c0_i32 = arith.constant 0 : i32
    %c0_i32_0 = arith.constant 0 : i32
    %c0_i32_1 = arith.constant 0 : i32
    return %c0_i32, %c0_i32_0 : i32, i32
  }
  func.func @transform_1(%arg0: i32) -> (i32, i32) {
    %c0_i32 = arith.constant 0 : i32
    %c0_i32_0 = arith.constant 0 : i32
    %c0_i32_1 = arith.constant 0 : i32
    return %c0_i32, %c0_i32_0 : i32, i32
  }
  func.func @transform_2(%arg0: i32) -> (i32, i32) {
    %c0_i32 = arith.constant 0 : i32
    %c0_i32_0 = arith.constant 0 : i32
    %c0_i32_1 = arith.constant 0 : i32
    return %c0_i32, %c0_i32_0 : i32, i32
  }
  func.func @transform_3(%arg0: i32) -> (i32, i32) {
    %c0_i32 = arith.constant 0 : i32
    %c0_i32_0 = arith.constant 0 : i32
    %c0_i32_1 = arith.constant 0 : i32
    return %c0_i32, %c0_i32_0 : i32, i32
  }
  func.func @transform_4(%arg0: i32) -> (i32, i32) {
    %c0_i32 = arith.constant 0 : i32
    %c0_i32_0 = arith.constant 0 : i32
    %c0_i32_1 = arith.constant 0 : i32
    return %c0_i32, %c0_i32_0 : i32, i32
  }
  func.func @transform_5(%arg0: i32) -> (i32, i32) {
    %c0_i32 = arith.constant 0 : i32
    %c0_i32_0 = arith.constant 0 : i32
    %c0_i32_1 = arith.constant 0 : i32
    return %c0_i32, %c0_i32_0 : i32, i32
  }
  func.func @transform_6(%arg0: i32) -> (i32, i32) {
    %c0_i32 = arith.constant 0 : i32
    %c0_i32_0 = arith.constant 0 : i32
    %c0_i32_1 = arith.constant 0 : i32
    return %c0_i32, %c0_i32_0 : i32, i32
  }
}

</mosaic_0001>

<bundles_post_ra>
// kernel: tpu_custom_call.1
= control target key start
LH: loop header
LB: loop body
LE: loop exit
PB: predicated region body
PF: predicated region fallthrough
CT: control target
= control target key end

     0   :  { %11 = vsyncpa [#allocation4], 0  ;;  %s1045_s0 = inlined_call_operand.hbm [shape: f32[8,16], index: 0, kind: input, shape index: {}]   ;;  %s1046_s1 = inlined_call_operand.hbm [shape: f32[16,128], index: 1, kind: input, shape index: {}]   ;;  %s1047_s2 = inlined_call_operand.hbm [shape: f32[32,128], index: 2, kind: input, shape index: {}]   ;;  %s1048_s3 = inlined_call_operand.vmem [shape: f32[1,128], index: 3, kind: input, shape index: {}]   ;;  %s1049_s4 = inlined_call_operand.hbm [shape: f32[32,128], index: 4, kind: input, shape index: {}]   ;;  %s1050_s5 = inlined_call_operand.vmem [shape: f32[1,128], index: 5, kind: input, shape index: {}]   ;;  %s1051_s6 = inlined_call_operand.hbm [shape: f32[8,128], index: 6, kind: output, shape index: {}]  }
   0x1   :  { %12 = vsyncpa [#allocation7], 0 }
   0x2   :  { %13 = vsyncpa [#allocation10], 0  ;;  %s30_s23 = sshll.u32 %s1046_s1, 4  ;;  %s31_s23 = int_to_ptr.hbm [resolvable:$true] %s30_s23 }
   0x3   :  { %14 = vsyncpa [#allocation5], 0  ;;  %s935_s24 = smov [#allocation6]   ;;  %s20_s28 = sshll.u32 %s1045_s0, 4  ;;  %s21_s28 = int_to_ptr.hbm [resolvable:$true] %s20_s28 }
   0x4   :  { %s32_s25 = sshll.u32 %s935_s24, 4  ;;  %s936_s29 = smov 128   ;;  %s33_s25 = int_to_ptr.vmem [resolvable:$true] %s32_s25 }
   0x5   :  { %s937_s30 = smov 8   ;;  %s938_s7 = smov [#allocation3]  }
   0x6   :  { %38 = dma.hbm_to_vmem [thread:$0]  %s31_s23, 256, %s33_s25, [#allocation7], %s936_s29, %s936_s29, %s937_s30  }
   0x7   :  { %s22_s8 = sshll.u32 %s938_s7, 4  ;;  %s43_s11 = sshll.u32 %s1047_s2, 4  ;;  %s23_s8 = int_to_ptr.vmem [resolvable:$true] %s22_s8  ;;  %s44_s11 = int_to_ptr.hbm [resolvable:$true] %s43_s11 }
   0x8   :  { %25 = dma.hbm_to_vmem [thread:$0]  %s21_s28, 128, %s23_s8, [#allocation4]  }
   0x9   :  { %s58_s13 = sshll.u32 %s1049_s4, 4  ;;  %s939_s14 = smov [#allocation8]   ;;  %s59_s13 = int_to_ptr.hbm [resolvable:$true] %s58_s13 }
   0xa   :  { %s45_s15 = sshll.u32 %s939_s14, 4  ;;  %s940_s0 = smov [#allocation9]   ;;  %s46_s15 = int_to_ptr.vmem [resolvable:$true] %s45_s15 }
   0xb   :  { %51 = dma.hbm_to_vmem [thread:$0]  %s44_s11, 512, %s46_s15, [#allocation7], %s936_s29, %s936_s29, %s937_s30  }
   0xc   :  { %s60_s16 = sshll.u32 %s940_s0, 4  ;;  %s61_s16 = int_to_ptr.vmem [resolvable:$true] %s60_s16 }
   0xd   :  { %66 = dma.hbm_to_vmem [thread:$0]  %s59_s13, 512, %s61_s16, [#allocation10], %s936_s29, %s936_s29, %s937_s30  }
   0xe   :  { %927 = dma.done.wait [#allocation4], 128  }
   0xf   :  { %928 = vsyncadd [#allocation4], 4294967168 }
  0x10   :  { %929 = dma.done.wait [#allocation7], 768  }
  0x11   :  { %930 = vsyncadd [#allocation7], 4294966528 }
  0x12   :  { %931 = dma.done.wait [#allocation10], 512  }
  0x13   :  { %932 = vsyncadd [#allocation10], 4294966784  ;;  %v87_v0 = vld [vmem:[#allocation6 + $0x8] sm:$0xff]  ;;  %v86_v1 = vld [vmem:[#allocation6] sm:$0xff]  ;;  %vm92_vm0 = vcmask 130048   ;;  %v941_v7 = vmov 0.0  }
  0x14   :  { %110 = vmatpush.msra.mxu0 %v87_v0  ;;  %v85_v2 = vld [vmem:[#allocation3] sm:$0xff]  ;;  %v121_v3 = vld [vmem:[#allocation8 + $0x18] sm:$0xff]  ;;  %v120_v4 = vld [vmem:[#allocation8 + $0x10] sm:$0xff]  ;;  %s942_s17 = smov 64   ;;  %vm122_vm5 = vcmask 261120   ;;  %vm647_vm14 = vcmask 1040384  }
  0x15   :  { %138 = vmatpush.msra.mxu1 %v121_v3  ;;  %202 = vmatpush.msra.mxu2 %v121_v3  ;;  %v119_v5 = vld [vmem:[#allocation8 + $0x8] sm:$0xff]  ;;  %v118_v6 = vld [vmem:[#allocation8] sm:$0xff]  ;;  %vm649_vm15 = vcmask 1041408   ;;  %s944_s20 = smov [#allocation11]   ;;  %s702_s24 = sshll.u32 %s1051_s6, 4  ;;  %s703_s24 = int_to_ptr.hbm [resolvable:$true] %s702_s24 }
  0x16   :  { %111 = vmatpush.msra.mxu0 %v86_v1  ;;  %266 = vmatpush.msra.mxu3 %v121_v3  ;;  %v741_v8 = vld [vmem:[%s1048_s3] ss:$0 sm:$0xff]  ;;  %s943_s3 = smov 32   ;;  %s700_s21 = sshll.u32 %s944_s20, 4  ;;  %s701_s21 = int_to_ptr.vmem [resolvable:$true] %s700_s21 }
  0x17   :  { %714 = vmatmul.msk.f32.vlgmr.msra.gmra.mxu0 %vm92_vm0, %v85_v2  ;;  %139 = vmatpush.msra.mxu1 %v120_v4 }
  0x18   :  { %203 = vmatpush.msra.mxu2 %v120_v4  ;;  %267 = vmatpush.msra.mxu3 %v120_v4 }
  0x19   :  { %140 = vmatpush.msra.mxu1 %v119_v5  ;;  %330 = vmatpush.msrb.mxu0 %v121_v3 }
  0x1a   :  { %204 = vmatpush.msra.mxu2 %v119_v5  ;;  %268 = vmatpush.msra.mxu3 %v119_v5 }
  0x1b   :  { %141 = vmatpush.msra.mxu1 %v118_v6  ;;  %331 = vmatpush.msrb.mxu0 %v120_v4 }
  0x1c   :  { %142 = vmatmul.f32.vlgmr.msra.gmra.mxu1 %v941_v7  ;;  %205 = vmatpush.msra.mxu2 %v118_v6 }
  0x1d   :  { %269 = vmatpush.msra.mxu3 %v118_v6  ;;  %332 = vmatpush.msrb.mxu0 %v119_v5 }
  0x1e   :  { %394 = vmatpush.msrb.mxu1 %v121_v3  ;;  %458 = vmatpush.msrb.mxu2 %v121_v3 }
  0x1f   :  { %333 = vmatpush.msrb.mxu0 %v118_v6  ;;  %522 = vmatpush.msrb.mxu3 %v121_v3 }
  0x20   :  { %395 = vmatpush.msrb.mxu1 %v120_v4  ;;  %459 = vmatpush.msrb.mxu2 %v120_v4 }
  0x21   :  { %523 = vmatpush.msrb.mxu3 %v120_v4  ;;  %586 = vmatpush.msra.mxu0 %v121_v3 }
  0x22   :  { %396 = vmatpush.msrb.mxu1 %v119_v5  ;;  %460 = vmatpush.msrb.mxu2 %v119_v5 }
  0x23   :  { %524 = vmatpush.msrb.mxu3 %v119_v5  ;;  %587 = vmatpush.msra.mxu0 %v120_v4 }
  0x24   :  { %397 = vmatpush.msrb.mxu1 %v118_v6  ;;  %461 = vmatpush.msrb.mxu2 %v118_v6 }
  0x25   :  { %525 = vmatpush.msrb.mxu3 %v118_v6  ;;  %588 = vmatpush.msra.mxu0 %v119_v5 }
  0x27   :  { %589 = vmatpush.msra.mxu0 %v118_v6 }
  0x94   :  { %v113_v9 = vpop.f32.mrf.mxu0 }
  0x95   :  { %v114_v10 = vadd.f32 %v741_v8, %v113_v9 }
  0x97   :  { %116 = vst [vmem:[#allocation2] sm:$0xff] %v114_v10 }
  0x99   :  { %v143_v11 = vpop.f32.mrf.mxu1 }
  0x9e   :  { %v117_v12 = vld [vmem:[#allocation2] sm:$0x1]  ;;  %v184_v37 = vld [vmem:[#allocation2 + $0x1] sm:$0x1]  ;;  %v248_v63 = vld [vmem:[#allocation2 + $0x2] sm:$0x1] }
  0x9f   :  { %v146_v13 = vadd.f32 %v143_v11, %v117_v12 }
  0xa1   :  { %743 = vtanh.f32 %v146_v13  ;;  %v715_v15 = vmul.f32 -1.442695, %v146_v13 }
  0xa3   :  { %745 = vpow2.f32 %v715_v15 }
  0xa7   :  { %v744_v14 = vpop.eup %743 }
  0xa8   :  { %169 = vrot.lane.b32.xlu0 %v744_v14, %s942_s17 }
  0xa9   :  { %v746_v16 = vpop.eup %745 }
  0xaa   :  { %v150_v17 = vadd.f32 1.0, %v746_v16 }
  0xac   :  { %747 = vrcp.f32 %v150_v17  ;;  %v162_v23 = vand.u32 2147483648, %v150_v17  ;;  %vm156_vm2 = vweird.f32 %v150_v17  ;;  %v160_v24 = vand.u32 2147483647, %v150_v17 }
  0xae   :  { %v163_v26 = vor.u32 1.1754944e-38, %v162_v23  ;;  %vm161_vm4 = vcmp.eq.f32.partialorder %v160_v24, 8.507059e+37 }
  0xb2   :  { %v748_v18 = vpop.eup %747 }
  0xb3   :  { %v152_v19 = vmul.f32 %v748_v18, %v150_v17  ;;  %vm157_vm1 = vweird.f32 %v748_v18 }
  0xb4   :  { %vm158_vm3 = vmor %vm156_vm2, %vm157_vm1 }
  0xb5   :  { %v153_v20 = vsub.f32 1.0, %v152_v19 }
  0xb7   :  { %v154_v21 = vmul.f32 %v748_v18, %v153_v20 }
  0xb9   :  { %v155_v22 = vadd.f32 %v748_v18, %v154_v21 }
  0xbb   :  { %v159_v25 = vsel %vm158_vm3, %v748_v18, %v155_v22 }
  0xbc   :  { %v164_v28 = vsel %vm161_vm4, %v163_v26, %v159_v25  ;;  %vm651_vm4 = vcmask 1042432  }
  0xbd   :  { %v167_v30 = vmul.f32 0.0, %v164_v28 }
 0x11a   :  { %v170_v27 = vpop.permute.xlu0 %169 }
 0x11b   :  { %v172_v29 = vmul.f32 %v170_v27, %v164_v28 }
 0x11d   :  { %174 = vrot.lane.b32.xlu0 %v172_v29, %s943_s3  ;;  %v312_v29 = vld [vmem:[#allocation2 + $0x3] sm:$0x1] }
 0x18f   :  { %v175_v31 = vpop.permute.xlu0 %174 }
 0x190   :  { %v177_v32 = vadd.f32 %v175_v31, %v167_v30 }
 0x192   :  { %749 = vtanh.f32 %v177_v32 }
 0x198   :  { %v750_v33 = vpop.eup %749 }
 0x199   :  { %180 = vrot.lane.b32.xlu1 %v750_v33, %s942_s17 }
 0x20b   :  { %v181_v34 = vpop.permute.xlu1 %180 }
 0x20c   :  { %v998_v35 = vmul.f32 %v181_v34, %v164_v28 }
 0x20e   :  { %186 = vrot.lane.b32.xlu1 %v998_v35, %s943_s3 }
 0x280   :  { %v187_v36 = vpop.permute.xlu1 %186 }
 0x281   :  { %716 = vmatmul.msk.f32.vlgmr.msra.gmra.mxu2 %vm122_vm5, %v187_v36 }
 0x304   :  { %v207_v38 = vpop.f32.mrf.mxu2 }
 0x305   :  { %v210_v39 = vadd.f32 %v207_v38, %v184_v37 }
 0x307   :  { %751 = vtanh.f32 %v210_v39  ;;  %v717_v41 = vmul.f32 -1.442695, %v210_v39 }
 0x309   :  { %753 = vpow2.f32 %v717_v41 }
 0x30d   :  { %v752_v40 = vpop.eup %751 }
 0x30e   :  { %233 = vrot.lane.b32.xlu2 %v752_v40, %s942_s17 }
 0x30f   :  { %v754_v42 = vpop.eup %753 }
 0x310   :  { %v214_v43 = vadd.f32 1.0, %v754_v42 }
 0x312   :  { %755 = vrcp.f32 %v214_v43  ;;  %v226_v49 = vand.u32 2147483648, %v214_v43  ;;  %vm220_vm7 = vweird.f32 %v214_v43  ;;  %v224_v50 = vand.u32 2147483647, %v214_v43 }
 0x314   :  { %v227_v52 = vor.u32 1.1754944e-38, %v226_v49  ;;  %vm225_vm9 = vcmp.eq.f32.partialorder %v224_v50, 8.507059e+37 }
 0x318   :  { %v756_v44 = vpop.eup %755 }
 0x319   :  { %v216_v45 = vmul.f32 %v756_v44, %v214_v43  ;;  %vm221_vm6 = vweird.f32 %v756_v44 }
 0x31a   :  { %vm222_vm8 = vmor %vm220_vm7, %vm221_vm6 }
 0x31b   :  { %v217_v46 = vsub.f32 1.0, %v216_v45 }
 0x31d   :  { %v218_v47 = vmul.f32 %v756_v44, %v217_v46 }
 0x31f   :  { %v219_v48 = vadd.f32 %v756_v44, %v218_v47 }
 0x321   :  { %v223_v51 = vsel %vm222_vm8, %v756_v44, %v219_v48 }
 0x322   :  { %v228_v54 = vsel %vm225_vm9, %v227_v52, %v223_v51 }
 0x323   :  { %v231_v56 = vmul.f32 %v228_v54, %v177_v32 }
 0x368   :  { %v234_v53 = vpop.permute.xlu2 %233 }
 0x369   :  { %v236_v55 = vmul.f32 %v234_v53, %v228_v54 }
 0x36b   :  { %238 = vrot.lane.b32.xlu2 %v236_v55, %s943_s3 }
 0x3c5   :  { %v239_v57 = vpop.permute.xlu2 %238 }
 0x3c6   :  { %v241_v58 = vadd.f32 %v239_v57, %v231_v56  ;;  %v376_v57 = vld [vmem:[#allocation2 + $0x4] sm:$0x1] }
 0x3c8   :  { %757 = vtanh.f32 %v241_v58 }
 0x3ce   :  { %v758_v59 = vpop.eup %757 }
 0x3cf   :  { %244 = vrot.lane.b32.xlu0 %v758_v59, %s942_s17 }
 0x441   :  { %v245_v60 = vpop.permute.xlu0 %244 }
 0x442   :  { %v247_v61 = vmul.f32 %v245_v60, %v228_v54 }
 0x444   :  { %250 = vrot.lane.b32.xlu1 %v247_v61, %s943_s3  ;;  %v632_v22 = vrot.slane %v247_v61, 7 }
 0x446   :  { %v648_v26 = vsel %vm647_vm14, %v998_v35, %v632_v22 }
 0x4b6   :  { %v251_v62 = vpop.permute.xlu1 %250 }
 0x4b7   :  { %718 = vmatmul.msk.f32.vlgmr.msra.gmra.mxu3 %vm122_vm5, %v251_v62 }
 0x53a   :  { %v271_v0 = vpop.f32.mrf.mxu3 }
 0x53b   :  { %v274_v1 = vadd.f32 %v271_v0, %v248_v63 }
 0x53d   :  { %759 = vtanh.f32 %v274_v1  ;;  %v719_v3 = vmul.f32 -1.442695, %v274_v1 }
 0x53f   :  { %761 = vpow2.f32 %v719_v3 }
 0x543   :  { %v760_v2 = vpop.eup %759 }
 0x544   :  { %297 = vrot.lane.b32.xlu2 %v760_v2, %s942_s17 }
 0x545   :  { %v762_v4 = vpop.eup %761 }
 0x546   :  { %v278_v5 = vadd.f32 1.0, %v762_v4 }
 0x548   :  { %763 = vrcp.f32 %v278_v5  ;;  %v290_v11 = vand.u32 2147483648, %v278_v5  ;;  %vm284_vm11 = vweird.f32 %v278_v5  ;;  %v288_v12 = vand.u32 2147483647, %v278_v5 }
 0x54a   :  { %v291_v14 = vor.u32 1.1754944e-38, %v290_v11  ;;  %vm289_vm13 = vcmp.eq.f32.partialorder %v288_v12, 8.507059e+37 }
 0x54e   :  { %v764_v6 = vpop.eup %763 }
 0x54f   :  { %v280_v7 = vmul.f32 %v764_v6, %v278_v5  ;;  %vm285_vm10 = vweird.f32 %v764_v6 }
 0x550   :  { %vm286_vm12 = vmor %vm284_vm11, %vm285_vm10  ;;  %vm653_vm10 = vcmask 1043456  }
 0x551   :  { %v281_v8 = vsub.f32 1.0, %v280_v7 }
 0x553   :  { %v282_v9 = vmul.f32 %v764_v6, %v281_v8 }
 0x555   :  { %v283_v10 = vadd.f32 %v764_v6, %v282_v9 }
 0x557   :  { %v287_v13 = vsel %vm286_vm12, %v764_v6, %v283_v10 }
 0x558   :  { %v292_v16 = vsel %vm289_vm13, %v291_v14, %v287_v13 }
 0x559   :  { %v295_v18 = vmul.f32 %v292_v16, %v241_v58 }
 0x59e   :  { %v298_v15 = vpop.permute.xlu2 %297 }
 0x59f   :  { %v300_v17 = vmul.f32 %v298_v15, %v292_v16 }
 0x5a1   :  { %302 = vrot.lane.b32.xlu0 %v300_v17, %s943_s3 }
 0x613   :  { %v303_v19 = vpop.permute.xlu0 %302 }
 0x614   :  { %v305_v20 = vadd.f32 %v303_v19, %v295_v18 }
 0x616   :  { %765 = vtanh.f32 %v305_v20 }
 0x61c   :  { %v766_v21 = vpop.eup %765 }
 0x61d   :  { %308 = vrot.lane.b32.xlu1 %v766_v21, %s942_s17  ;;  %v440_v21 = vld [vmem:[#allocation2 + $0x5] sm:$0x1] }
 0x68f   :  { %v309_v23 = vpop.permute.xlu1 %308 }
 0x690   :  { %v311_v24 = vmul.f32 %v309_v23, %v292_v16 }
 0x692   :  { %v634_v25 = vrot.slane %v311_v24, 6  ;;  %314 = vrot.lane.b32.xlu2 %v311_v24, %s943_s3 }
 0x694   :  { %v650_v27 = vsel %vm649_vm15, %v648_v26, %v634_v25  ;;  %vm655_vm15 = vcmask 1044480  }
 0x6ec   :  { %v315_v28 = vpop.permute.xlu2 %314 }
 0x6ed   :  { %720 = vmatmul.msk.f32.vlgmr.msrb.gmra.mxu0 %vm122_vm5, %v315_v28 }
 0x76a   :  { %v335_v30 = vpop.f32.mrf.mxu0 }
 0x76b   :  { %v338_v31 = vadd.f32 %v335_v30, %v312_v29 }
 0x76d   :  { %767 = vtanh.f32 %v338_v31  ;;  %v721_v33 = vmul.f32 -1.442695, %v338_v31 }
 0x76f   :  { %769 = vpow2.f32 %v721_v33 }
 0x773   :  { %v768_v32 = vpop.eup %767 }
 0x774   :  { %361 = vrot.lane.b32.xlu0 %v768_v32, %s942_s17 }
 0x775   :  { %v770_v34 = vpop.eup %769 }
 0x776   :  { %v342_v36 = vadd.f32 1.0, %v770_v34 }
 0x778   :  { %771 = vrcp.f32 %v342_v36  ;;  %v354_v41 = vand.u32 2147483648, %v342_v36  ;;  %vm348_vm1 = vweird.f32 %v342_v36  ;;  %v352_v42 = vand.u32 2147483647, %v342_v36 }
 0x77a   :  { %v355_v44 = vor.u32 1.1754944e-38, %v354_v41  ;;  %vm353_vm3 = vcmp.eq.f32.partialorder %v352_v42, 8.507059e+37 }
 0x77e   :  { %v772_v37 = vpop.eup %771 }
 0x77f   :  { %v344_v38 = vmul.f32 %v772_v37, %v342_v36  ;;  %vm349_vm0 = vweird.f32 %v772_v37 }
 0x780   :  { %vm350_vm2 = vmor %vm348_vm1, %vm349_vm0 }
 0x781   :  { %v345_v39 = vsub.f32 1.0, %v344_v38 }
 0x783   :  { %v346_v35 = vmul.f32 %v772_v37, %v345_v39 }
 0x785   :  { %v347_v40 = vadd.f32 %v772_v37, %v346_v35 }
 0x787   :  { %v351_v43 = vsel %vm350_vm2, %v772_v37, %v347_v40 }
 0x788   :  { %v356_v46 = vsel %vm353_vm3, %v355_v44, %v351_v43 }
 0x789   :  { %v359_v48 = vmul.f32 %v356_v46, %v305_v20 }
 0x7e6   :  { %v362_v45 = vpop.permute.xlu0 %361 }
 0x7e7   :  { %v364_v47 = vmul.f32 %v362_v45, %v356_v46 }
 0x7e9   :  { %366 = vrot.lane.b32.xlu1 %v364_v47, %s943_s3 }
 0x85b   :  { %v367_v49 = vpop.permute.xlu1 %366 }
 0x85c   :  { %v369_v50 = vadd.f32 %v367_v49, %v359_v48  ;;  %v504_v49 = vld [vmem:[#allocation2 + $0x6] sm:$0x1] }
 0x85e   :  { %773 = vtanh.f32 %v369_v50 }
 0x864   :  { %v774_v51 = vpop.eup %773 }
 0x865   :  { %372 = vrot.lane.b32.xlu2 %v774_v51, %s942_s17 }
 0x8bf   :  { %v373_v52 = vpop.permute.xlu2 %372 }
 0x8c0   :  { %v375_v53 = vmul.f32 %v373_v52, %v356_v46 }
 0x8c2   :  { %v636_v54 = vrot.slane %v375_v53, 5  ;;  %378 = vrot.lane.b32.xlu0 %v375_v53, %s943_s3 }
 0x8c4   :  { %v652_v55 = vsel %vm651_vm4, %v650_v27, %v636_v54  ;;  %vm657_vm4 = vcmask 1045504  }
 0x934   :  { %v379_v56 = vpop.permute.xlu0 %378 }
 0x935   :  { %722 = vmatmul.msk.f32.vlgmr.msrb.gmra.mxu1 %vm122_vm5, %v379_v56 }
 0x9b2   :  { %v399_v58 = vpop.f32.mrf.mxu1 }
 0x9b3   :  { %v402_v59 = vadd.f32 %v399_v58, %v376_v57 }
 0x9b5   :  { %775 = vtanh.f32 %v402_v59  ;;  %v723_v61 = vmul.f32 -1.442695, %v402_v59 }
 0x9b7   :  { %777 = vpow2.f32 %v723_v61 }
 0x9bb   :  { %v776_v60 = vpop.eup %775 }
 0x9bc   :  { %425 = vrot.lane.b32.xlu1 %v776_v60, %s942_s17 }
 0x9bd   :  { %v778_v62 = vpop.eup %777 }
 0x9be   :  { %v406_v63 = vadd.f32 1.0, %v778_v62 }
 0x9c0   :  { %779 = vrcp.f32 %v406_v63  ;;  %v418_v5 = vand.u32 2147483648, %v406_v63  ;;  %vm412_vm7 = vweird.f32 %v406_v63  ;;  %v416_v6 = vand.u32 2147483647, %v406_v63 }
 0x9c2   :  { %v419_v8 = vor.u32 1.1754944e-38, %v418_v5  ;;  %vm417_vm9 = vcmp.eq.f32.partialorder %v416_v6, 8.507059e+37 }
 0x9c6   :  { %v780_v0 = vpop.eup %779 }
 0x9c7   :  { %v408_v1 = vmul.f32 %v780_v0, %v406_v63  ;;  %vm413_vm6 = vweird.f32 %v780_v0 }
 0x9c8   :  { %vm414_vm8 = vmor %vm412_vm7, %vm413_vm6 }
 0x9c9   :  { %v409_v2 = vsub.f32 1.0, %v408_v1 }
 0x9cb   :  { %v410_v3 = vmul.f32 %v780_v0, %v409_v2 }
 0x9cd   :  { %v411_v4 = vadd.f32 %v780_v0, %v410_v3 }
 0x9cf   :  { %v415_v7 = vsel %vm414_vm8, %v780_v0, %v411_v4 }
 0x9d0   :  { %v420_v10 = vsel %vm417_vm9, %v419_v8, %v415_v7 }
 0x9d1   :  { %v423_v12 = vmul.f32 %v420_v10, %v369_v50 }
 0xa2e   :  { %v426_v9 = vpop.permute.xlu1 %425 }
 0xa2f   :  { %v428_v11 = vmul.f32 %v426_v9, %v420_v10 }
 0xa31   :  { %430 = vrot.lane.b32.xlu2 %v428_v11, %s943_s3 }
 0xa8b   :  { %v431_v13 = vpop.permute.xlu2 %430 }
 0xa8c   :  { %v433_v14 = vadd.f32 %v431_v13, %v423_v12  ;;  %v568_v13 = vld [vmem:[#allocation2 + $0x7] sm:$0x1] }
 0xa8e   :  { %781 = vtanh.f32 %v433_v14 }
 0xa94   :  { %v782_v15 = vpop.eup %781 }
 0xa95   :  { %436 = vrot.lane.b32.xlu0 %v782_v15, %s942_s17 }
 0xb07   :  { %v437_v16 = vpop.permute.xlu0 %436 }
 0xb08   :  { %v439_v17 = vmul.f32 %v437_v16, %v420_v10 }
 0xb0a   :  { %v638_v18 = vrot.slane %v439_v17, 4  ;;  %442 = vrot.lane.b32.xlu1 %v439_v17, %s943_s3 }
 0xb0c   :  { %v654_v19 = vsel %vm653_vm10, %v652_v55, %v638_v18  ;;  %vm659_vm10 = vcmask 1046528  }
 0xb7c   :  { %v443_v20 = vpop.permute.xlu1 %442 }
 0xb7d   :  { %724 = vmatmul.msk.f32.vlgmr.msrb.gmra.mxu2 %vm122_vm5, %v443_v20 }
 0xc00   :  { %v463_v22 = vpop.f32.mrf.mxu2 }
 0xc01   :  { %v466_v23 = vadd.f32 %v463_v22, %v440_v21 }
 0xc03   :  { %783 = vtanh.f32 %v466_v23  ;;  %v725_v25 = vmul.f32 -1.442695, %v466_v23 }
 0xc05   :  { %785 = vpow2.f32 %v725_v25 }
 0xc09   :  { %v784_v24 = vpop.eup %783 }
 0xc0a   :  { %489 = vrot.lane.b32.xlu2 %v784_v24, %s942_s17 }
 0xc0b   :  { %v786_v26 = vpop.eup %785 }
 0xc0c   :  { %v470_v27 = vadd.f32 1.0, %v786_v26 }
 0xc0e   :  { %787 = vrcp.f32 %v470_v27  ;;  %v482_v33 = vand.u32 2147483648, %v470_v27  ;;  %vm476_vm12 = vweird.f32 %v470_v27  ;;  %v480_v34 = vand.u32 2147483647, %v470_v27 }
 0xc10   :  { %v483_v37 = vor.u32 1.1754944e-38, %v482_v33  ;;  %vm481_vm14 = vcmp.eq.f32.partialorder %v480_v34, 8.507059e+37 }
 0xc14   :  { %v788_v28 = vpop.eup %787 }
 0xc15   :  { %v472_v29 = vmul.f32 %v788_v28, %v470_v27  ;;  %vm477_vm11 = vweird.f32 %v788_v28 }
 0xc16   :  { %vm478_vm13 = vmor %vm476_vm12, %vm477_vm11 }
 0xc17   :  { %v473_v30 = vsub.f32 1.0, %v472_v29 }
 0xc19   :  { %v474_v31 = vmul.f32 %v788_v28, %v473_v30 }
 0xc1b   :  { %v475_v32 = vadd.f32 %v788_v28, %v474_v31 }
 0xc1d   :  { %v479_v36 = vsel %vm478_vm13, %v788_v28, %v475_v32 }
 0xc1e   :  { %v484_v39 = vsel %vm481_vm14, %v483_v37, %v479_v36  ;;  %v664_v37 = vld [vmem:[#allocation9 + $0x18] sm:$0xff] }
 0xc1f   :  { %v487_v40 = vmul.f32 %v484_v39, %v433_v14  ;;  %686 = vmatpush.msra.mxu1 %v664_v37 }
 0xc64   :  { %v490_v38 = vpop.permute.xlu2 %489 }
 0xc65   :  { %v492_v35 = vmul.f32 %v490_v38, %v484_v39  ;;  %v663_v38 = vld [vmem:[#allocation9 + $0x10] sm:$0xff] }
 0xc66   :  { %687 = vmatpush.msra.mxu1 %v663_v38 }
 0xc67   :  { %494 = vrot.lane.b32.xlu0 %v492_v35, %s943_s3  ;;  %v661_v35 = vld [vmem:[#allocation9] sm:$0xff] }
 0xcd9   :  { %v495_v41 = vpop.permute.xlu0 %494 }
 0xcda   :  { %v497_v42 = vadd.f32 %v495_v41, %v487_v40 }
 0xcdc   :  { %789 = vtanh.f32 %v497_v42 }
 0xce2   :  { %v790_v43 = vpop.eup %789 }
 0xce3   :  { %500 = vrot.lane.b32.xlu1 %v790_v43, %s942_s17 }
 0xd55   :  { %v501_v44 = vpop.permute.xlu1 %500 }
 0xd56   :  { %v503_v45 = vmul.f32 %v501_v44, %v484_v39  ;;  %v662_v39 = vld [vmem:[#allocation9 + $0x8] sm:$0xff] }
 0xd57   :  { %688 = vmatpush.msra.mxu1 %v662_v39 }
 0xd58   :  { %v640_v46 = vrot.slane %v503_v45, 3  ;;  %506 = vrot.lane.b32.xlu2 %v503_v45, %s943_s3  ;;  %v742_v45 = vld [vmem:[%s1050_s5] ss:$0 sm:$0xff] }
 0xd59   :  { %689 = vmatpush.msra.mxu1 %v661_v35 }
 0xd5a   :  { %v656_v47 = vsel %vm655_vm15, %v654_v19, %v640_v46 }
 0xdb2   :  { %v507_v48 = vpop.permute.xlu2 %506 }
 0xdb3   :  { %726 = vmatmul.msk.f32.vlgmr.msrb.gmra.mxu3 %vm122_vm5, %v507_v48 }
 0xe36   :  { %v527_v50 = vpop.f32.mrf.mxu3 }
 0xe37   :  { %v530_v51 = vadd.f32 %v527_v50, %v504_v49 }
 0xe39   :  { %791 = vtanh.f32 %v530_v51  ;;  %v727_v53 = vmul.f32 -1.442695, %v530_v51 }
 0xe3b   :  { %793 = vpow2.f32 %v727_v53 }
 0xe3f   :  { %v792_v52 = vpop.eup %791 }
 0xe40   :  { %553 = vrot.lane.b32.xlu0 %v792_v52, %s942_s17 }
 0xe41   :  { %v794_v54 = vpop.eup %793 }
 0xe42   :  { %v534_v55 = vadd.f32 1.0, %v794_v54 }
 0xe44   :  { %795 = vrcp.f32 %v534_v55  ;;  %v546_v61 = vand.u32 2147483648, %v534_v55  ;;  %vm540_vm1 = vweird.f32 %v534_v55  ;;  %v544_v62 = vand.u32 2147483647, %v534_v55 }
 0xe46   :  { %v547_v0 = vor.u32 1.1754944e-38, %v546_v61  ;;  %vm545_vm3 = vcmp.eq.f32.partialorder %v544_v62, 8.507059e+37 }
 0xe4a   :  { %v796_v56 = vpop.eup %795 }
 0xe4b   :  { %v536_v57 = vmul.f32 %v796_v56, %v534_v55  ;;  %vm541_vm0 = vweird.f32 %v796_v56 }
 0xe4c   :  { %vm542_vm2 = vmor %vm540_vm1, %vm541_vm0 }
 0xe4d   :  { %v537_v58 = vsub.f32 1.0, %v536_v57 }
 0xe4f   :  { %v538_v59 = vmul.f32 %v796_v56, %v537_v58 }
 0xe51   :  { %v539_v60 = vadd.f32 %v796_v56, %v538_v59 }
 0xe53   :  { %v543_v63 = vsel %vm542_vm2, %v796_v56, %v539_v60 }
 0xe54   :  { %v548_v2 = vsel %vm545_vm3, %v547_v0, %v543_v63 }
 0xe55   :  { %v551_v4 = vmul.f32 %v548_v2, %v497_v42 }
 0xeb2   :  { %v554_v1 = vpop.permute.xlu0 %553 }
 0xeb3   :  { %v556_v3 = vmul.f32 %v554_v1, %v548_v2 }
 0xeb5   :  { %558 = vrot.lane.b32.xlu1 %v556_v3, %s943_s3 }
 0xf27   :  { %v559_v5 = vpop.permute.xlu1 %558 }
 0xf28   :  { %v561_v6 = vadd.f32 %v559_v5, %v551_v4 }
 0xf2a   :  { %797 = vtanh.f32 %v561_v6 }
 0xf30   :  { %v798_v7 = vpop.eup %797 }
 0xf31   :  { %564 = vrot.lane.b32.xlu2 %v798_v7, %s942_s17 }
 0xf8b   :  { %v565_v8 = vpop.permute.xlu2 %564 }
 0xf8c   :  { %v567_v9 = vmul.f32 %v565_v8, %v548_v2 }
 0xf8e   :  { %v642_v10 = vrot.slane %v567_v9, 2  ;;  %570 = vrot.lane.b32.xlu0 %v567_v9, %s943_s3 }
 0xf90   :  { %v658_v11 = vsel %vm657_vm4, %v656_v47, %v642_v10 }
0x1000   :  { %v571_v12 = vpop.permute.xlu0 %570 }
0x1001   :  { %728 = vmatmul.msk.f32.vlgmr.msra.gmra.mxu0 %vm122_vm5, %v571_v12 }
0x107e   :  { %v591_v14 = vpop.f32.mrf.mxu0 }
0x107f   :  { %v594_v15 = vadd.f32 %v591_v14, %v568_v13 }
0x1081   :  { %799 = vtanh.f32 %v594_v15  ;;  %v729_v17 = vmul.f32 -1.442695, %v594_v15 }
0x1083   :  { %801 = vpow2.f32 %v729_v17 }
0x1087   :  { %v800_v16 = vpop.eup %799 }
0x1088   :  { %617 = vrot.lane.b32.xlu1 %v800_v16, %s942_s17 }
0x1089   :  { %v802_v18 = vpop.eup %801 }
0x108a   :  { %v598_v19 = vadd.f32 1.0, %v802_v18 }
0x108c   :  { %803 = vrcp.f32 %v598_v19  ;;  %v610_v25 = vand.u32 2147483648, %v598_v19  ;;  %vm604_vm7 = vweird.f32 %v598_v19  ;;  %v608_v26 = vand.u32 2147483647, %v598_v19 }
0x108e   :  { %v611_v28 = vor.u32 1.1754944e-38, %v610_v25  ;;  %vm609_vm9 = vcmp.eq.f32.partialorder %v608_v26, 8.507059e+37 }
0x1092   :  { %v804_v20 = vpop.eup %803 }
0x1093   :  { %v600_v21 = vmul.f32 %v804_v20, %v598_v19  ;;  %vm605_vm6 = vweird.f32 %v804_v20 }
0x1094   :  { %vm606_vm8 = vmor %vm604_vm7, %vm605_vm6 }
0x1095   :  { %v601_v22 = vsub.f32 1.0, %v600_v21 }
0x1097   :  { %v602_v23 = vmul.f32 %v804_v20, %v601_v22 }
0x1099   :  { %v603_v24 = vadd.f32 %v804_v20, %v602_v23 }
0x109b   :  { %v607_v27 = vsel %vm606_vm8, %v804_v20, %v603_v24 }
0x109c   :  { %v612_v30 = vsel %vm609_vm9, %v611_v28, %v607_v27 }
0x109d   :  { %v615_v32 = vmul.f32 %v612_v30, %v561_v6 }
0x10fa   :  { %v618_v29 = vpop.permute.xlu1 %617 }
0x10fb   :  { %v620_v31 = vmul.f32 %v618_v29, %v612_v30 }
0x10fd   :  { %622 = vrot.lane.b32.xlu2 %v620_v31, %s943_s3 }
0x1157   :  { %v623_v33 = vpop.permute.xlu2 %622 }
0x1158   :  { %v625_v34 = vadd.f32 %v623_v33, %v615_v32 }
0x115a   :  { %805 = vtanh.f32 %v625_v34 }
0x1160   :  { %v806_v36 = vpop.eup %805 }
0x1161   :  { %628 = vrot.lane.b32.xlu0 %v806_v36, %s942_s17 }
0x11d3   :  { %v629_v40 = vpop.permute.xlu0 %628 }
0x11d4   :  { %v631_v41 = vmul.f32 %v629_v40, %v612_v30 }
0x11d6   :  { %v645_v42 = vrot.slane %v631_v41, 1 }
0x11d8   :  { %v660_v43 = vsel %vm659_vm10, %v658_v11, %v645_v42 }
0x11d9   :  { %670 = vrot.lane.b32.xlu1 %v660_v43, %s943_s3 }
0x124b   :  { %v671_v44 = vpop.permute.xlu1 %670 }
0x124c   :  { %730 = vmatmul.msk.f32.vlgmr.msra.gmra.mxu1 %vm122_vm5, %v671_v44 }
0x12c9   :  { %v691_v46 = vpop.f32.mrf.mxu1 }
0x12ca   :  { %v692_v47 = vadd.f32 %v742_v45, %v691_v46 }
0x12cc   :  { %694 = vst [vmem:[#allocation11] sm:$0xff] %v692_v47 }
0x12cd   :  { %705 = dma.vmem_to_hbm [thread:$0]  %s701_s21, 128, %s703_s24, [#allocation5]  }
0x12ce   :  { %933 = dma.done.wait [#allocation5], 128  }
0x12cf   :  { %934 = vsyncadd [#allocation5], 4294967168 }
0x12d0   :  { %710 = vsyncpa [#allocation4], 1 }
0x12d1   :  { %711 = vsyncpa [#allocation7], 1 }
0x12d2   :  { %712 = vsyncpa [#allocation10], 1 }
0x12d3   :  { %713 = vsyncpa [#allocation5], 1 }

</bundles_post_ra>
